<compile_context>
chip_gen: v6e
topology: v6e:2x2x1
jax: 0.10.0
libtpu: 0.0.40
codegen_flags: <defaults>
</compile_context>

<pallas_src>
import functools

import jax
import jax.numpy as jnp
from jax.experimental import pallas as pl
from jax.experimental.pallas import tpu as pltpu


def _conv_tokenizer_kernel(xp_ref, xc_ref, xn_ref, w_ref, b_ref, o_ref, *,
                           L, compute_dtype):
    # xp_ref / xc_ref / xn_ref: (1, C_in, TL) previous / current / next L-tiles
    # w_ref: (3, C_in, D)   taps k = 0, 1, 2  <->  x[l-1], x[l], x[l+1]
    # b_ref: (1, D) float32
    # o_ref: (1, TL, D)
    TL = o_ref.shape[1]
    C_in = xc_ref.shape[1]
    lt = pl.program_id(1)
    base = lt * TL

    xc = xc_ref[0].astype(compute_dtype)                       # (C_in, TL)
    halo_l = xp_ref[0, :, TL - 1:TL].astype(compute_dtype)     # x[:, base-1]
    halo_r = xn_ref[0, :, 0:1].astype(compute_dtype)           # x[:, base+TL]

    # Shifted windows for the k=0 / k=2 taps (x[l-1], x[l+1]).
    left = jnp.concatenate([halo_l, xc[:, :TL - 1]], axis=1)   # (C_in, TL)
    right = jnp.concatenate([xc[:, 1:], halo_r], axis=1)       # (C_in, TL)

    # Zero the padding taps at the sequence boundaries.  g is the global l of
    # each column.  The last tile may overrun L (grid = cdiv); those rows are
    # discarded by the masked output store, but the x[l+1] tap of the *valid*
    # row l = L-1 must still read zero, hence the g >= L-1 mask.
    g = base + jax.lax.broadcasted_iota(jnp.int32, (C_in, TL), 1)
    left = jnp.where(g == 0, jnp.zeros_like(left), left)
    right = jnp.where(g >= L - 1, jnp.zeros_like(right), right)

    # Three small MXU contractions over C_in into one f32 (TL, D) accumulator.
    # (Contracting dim 0 of the (C_in, TL) LHS; K is tiny and the kernel is
    #  HBM-bound, so any implicit transpose is hidden filler.)
    dn = (((0,), (0,)), ((), ()))
    w = w_ref[...].astype(compute_dtype)
    acc = jax.lax.dot_general(left, w[0], dn, preferred_element_type=jnp.float32)
    acc += jax.lax.dot_general(xc, w[1], dn, preferred_element_type=jnp.float32)
    acc += jax.lax.dot_general(right, w[2], dn, preferred_element_type=jnp.float32)

    o_ref[0] = (acc + b_ref[...]).astype(o_ref.dtype)


_VMEM_TILE_BUDGET = 32 * 1024 * 1024  # per-step data budget (fits v5e/v6e/v7x)


def _vmem_step_bytes(TL, D, C_in, in_bytes, w_bytes, out_bytes):
    """Double-buffered per-step VMEM footprint estimate."""
    x_views = 3 * 2 * C_in * TL * in_bytes      # prev / cur / next tile views
    out = 2 * TL * D * out_bytes
    w = 2 * 3 * C_in * D * w_bytes
    bias = 2 * D * 4
    return x_views + out + w + bias


def _select_tile_l(B, L, D, C_in, in_bytes, w_bytes, out_bytes, tile_l):
    if tile_l is not None:
        if tile_l > L or (tile_l % 128 != 0 and tile_l != L):
            raise ValueError("tile_l must be a multiple of 128 (or == L) and <= L")
        return tile_l
    # Largest tile (<= 1024, multiple of 128) whose footprint fits the budget.
    target = 1024
    while target > 128 and _vmem_step_bytes(
            target, D, C_in, in_bytes, w_bytes, out_bytes) > _VMEM_TILE_BUDGET:
        target //= 2
    if L > target:
        return target
    # L fits in one tile.  If that would leave a single grid point (B == 1),
    # split L so both TensorCores (v7x megacore) get work.
    if B == 1 and L >= 256:
        half = (L + 1) // 2
        return ((half + 127) // 128) * 128
    return L


@functools.partial(jax.jit,
                   static_argnames=("tile_l", "compute_dtype", "out_dtype"))
def conv_tokenizer(x_ncl, weight, bias, *, tile_l=None, compute_dtype=None,
                   out_dtype=None):
    """Pallas ConvTokenizer forward.

    Args:
      x_ncl:  (B, C_in, L)  PyTorch NCL layout.
      weight: (D, C_in, 3)  PyTorch Conv1d weight layout.
      bias:   (D,)
      tile_l: optional static L tile (multiple of 128, or == L).
      compute_dtype: optional operand dtype for the MXU (e.g. jnp.bfloat16);
        accumulation stays f32.
      out_dtype: optional output dtype (e.g. jnp.bfloat16) — halves the
        dominant HBM output stream.
    Returns:
      (B, L, D) == Conv1d(x).permute(0, 2, 1)
    """
    B, C_in, L = x_ncl.shape
    D, C_in_w, K = weight.shape
    if K != 3 or C_in_w != C_in:
        raise ValueError("ConvTokenizer kernel assumes kernel_size=3, matching C_in")

    cdt = jnp.dtype(compute_dtype) if compute_dtype is not None else x_ncl.dtype
    odt = jnp.dtype(out_dtype) if out_dtype is not None else x_ncl.dtype

    in_bytes = x_ncl.dtype.itemsize
    w_bytes = cdt.itemsize
    out_bytes = odt.itemsize
    TL = _select_tile_l(B, L, D, C_in, in_bytes, w_bytes, out_bytes, tile_l)
    n_lt = pl.cdiv(L, TL)

    # Weight (D, C_in, 3) -> (3, C_in, D); tap k reads x[l + k - 1].
    w3 = jnp.transpose(weight, (2, 1, 0)).astype(cdt)
    b2 = bias.reshape(1, D).astype(jnp.float32)

    kernel = functools.partial(_conv_tokenizer_kernel, L=L, compute_dtype=cdt)

    est = _vmem_step_bytes(TL, D, C_in, in_bytes, w_bytes, out_bytes)
    vmem_limit = int(min(est + (32 << 20), 56 << 20))  # safe on 64 MiB v7x

    grid = (B, n_lt)
    out = pl.pallas_call(
        kernel,
        out_shape=jax.ShapeDtypeStruct((B, L, D), odt),
        grid_spec=pltpu.PrefetchScalarGridSpec(
            num_scalar_prefetch=0,
            grid=grid,
            in_specs=[
                # previous / current / next L-tiles of x (halo columns come
                # from the neighbour views; indices clamped at the ends).
                pl.BlockSpec((1, C_in, TL),
                             lambda b, lt: (b, 0, jnp.maximum(lt - 1, 0))),
                pl.BlockSpec((1, C_in, TL), lambda b, lt: (b, 0, lt)),
                pl.BlockSpec((1, C_in, TL),
                             lambda b, lt: (b, 0, jnp.minimum(lt + 1, n_lt - 1))),
                pl.BlockSpec((3, C_in, D), lambda b, lt: (0, 0, 0)),
                pl.BlockSpec((1, D), lambda b, lt: (0, 0)),
            ],
            out_specs=pl.BlockSpec((1, TL, D), lambda b, lt: (b, lt, 0)),
        ),
        compiler_params=pltpu.CompilerParams(
            dimension_semantics=("parallel", "parallel"),
            vmem_limit_bytes=vmem_limit,
        ),
    )(x_ncl, x_ncl, x_ncl, w3, b2)
    return out


def conv_tokenizer_ref(x_ncl, weight, bias):
    """Pure-JAX reference (lax conv), matching PyTorch Conv1d semantics."""
    y = jax.lax.conv_general_dilated(
        x_ncl, weight,
        window_strides=(1,),
        padding=((1, 1),),
        dimension_numbers=("NCH", "OIH", "NCH"),
        precision=jax.lax.Precision.HIGHEST,
    )
    y = y + bias[None, :, None]
    return jnp.transpose(y, (0, 2, 1))


if __name__ == "__main__":
    key = jax.random.PRNGKey(0)
    kx, kw, kb, k1, k2 = jax.random.split(key, 5)

    # Shapes consistent with ConvTokenizer.forward: x is (B, in_chans, L).
    B, C_in, L, D = 2, 4, 16, 32
    x = jax.random.normal(kx, (B, C_in, L), dtype=jnp.float32)
    weight = jax.random.normal(kw, (D, C_in, 3), dtype=jnp.float32) * 0.1
    bias = jax.random.normal(kb, (D,), dtype=jnp.float32) * 0.1

    # 1) Single-tile path (TL == L), f32.
    out = jax.block_until_ready(conv_tokenizer(x, weight, bias))
    ref = conv_tokenizer_ref(x, weight, bias)
    assert out.shape == (B, L, D), out.shape
    assert jnp.allclose(out, ref, atol=2e-3, rtol=2e-3), (
        float(jnp.max(jnp.abs(out - ref))))

    # 2) Multi-tile path: halo columns cross L-tile boundaries.
    L2 = 384
    x2 = jax.random.normal(k1, (B, C_in, L2), dtype=jnp.float32)
    out2 = jax.block_until_ready(conv_tokenizer(x2, weight, bias, tile_l=128))
    ref2 = conv_tokenizer_ref(x2, weight, bias)
    assert out2.shape == (B, L2, D), out2.shape
    assert jnp.allclose(out2, ref2, atol=2e-3, rtol=2e-3), (
        float(jnp.max(jnp.abs(out2 - ref2))))

    # 3) Ragged tail (L % tile != 0): last tile masked, f32.
    L3 = 200
    x3 = jax.random.normal(k2, (B, C_in, L3), dtype=jnp.float32)
    out3 = jax.block_until_ready(conv_tokenizer(x3, weight, bias, tile_l=128))
    ref3 = conv_tokenizer_ref(x3, weight, bias)
    assert out3.shape == (B, L3, D), out3.shape
    assert jnp.allclose(out3, ref3, atol=2e-3, rtol=2e-3), (
        float(jnp.max(jnp.abs(out3 - ref3))))

    # 4) bf16 compute + bf16 output stream (roofline lever on mem-bound kernel).
    out4 = jax.block_until_ready(
        conv_tokenizer(x2, weight, bias, tile_l=128,
                       compute_dtype=jnp.bfloat16, out_dtype=jnp.bfloat16))
    assert out4.dtype == jnp.bfloat16
    assert jnp.allclose(out4.astype(jnp.float32), ref2, atol=6e-2, rtol=6e-2), (
        float(jnp.max(jnp.abs(out4.astype(jnp.float32) - ref2))))

    print("KERNEL_OK")
</pallas_src>

<mosaic_0001>
module attributes {stable_mosaic.version = 11 : i64} {
  func.func @_conv_tokenizer_kernel(%arg0: i32, %arg1: i32, %arg2: memref<1x4x16xf32, #tpu.memory_space<vmem>>, %arg3: memref<1x4x16xf32, #tpu.memory_space<vmem>>, %arg4: memref<1x4x16xf32, #tpu.memory_space<vmem>>, %arg5: memref<3x4x32xf32, #tpu.memory_space<vmem>>, %arg6: memref<1x32xf32, #tpu.memory_space<vmem>>, %arg7: memref<1x16x32xf32, #tpu.memory_space<vmem>>) attributes {dimension_semantics = [#tpu.dimension_semantics<parallel>, #tpu.dimension_semantics<parallel>], iteration_bounds = array<i64: 2, 1>, scalar_prefetch = 0 : i64, scratch_operands = 0 : i64, tpu.core_type = #tpu.core_type<tc>, window_params = [{transform_indices = @transform_0, window_bounds = array<i64: 1, 4, 16>}, {transform_indices = @transform_1, window_bounds = array<i64: 1, 4, 16>}, {transform_indices = @transform_2, window_bounds = array<i64: 1, 4, 16>}, {pipeline_mode = #tpu.pipeline_mode<synchronous>, transform_indices = @transform_3, window_bounds = array<i64: 3, 4, 32>}, {pipeline_mode = #tpu.pipeline_mode<synchronous>, transform_indices = @transform_4, window_bounds = array<i64: 1, 32>}, {transform_indices = @transform_5, window_bounds = array<i64: 1, 16, 32>}]} {
    %c16_i32 = arith.constant 16 : i32
    %0 = arith.muli %arg1, %c16_i32 : i32
    %c0 = arith.constant 0 : index
    %c0_0 = arith.constant 0 : index
    %c0_1 = arith.constant 0 : index
    %1 = vector.load %arg3[%c0, %c0_0, %c0_1] : memref<1x4x16xf32, #tpu.memory_space<vmem>>, vector<1x4x16xf32>
    %2 = vector.shape_cast %1 : vector<1x4x16xf32> to vector<4x16xf32>
    %c0_2 = arith.constant 0 : index
    %c0_3 = arith.constant 0 : index
    %c15 = arith.constant 15 : index
    %3 = vector.load %arg2[%c0_2, %c0_3, %c15] : memref<1x4x16xf32, #tpu.memory_space<vmem>>, vector<1x4x1xf32>
    %4 = vector.shape_cast %3 : vector<1x4x1xf32> to vector<4x1xf32>
    %c0_4 = arith.constant 0 : index
    %c0_5 = arith.constant 0 : index
    %c0_6 = arith.constant 0 : index
    %5 = vector.load %arg4[%c0_4, %c0_5, %c0_6] : memref<1x4x16xf32, #tpu.memory_space<vmem>>, vector<1x4x1xf32>
    %6 = vector.shape_cast %5 : vector<1x4x1xf32> to vector<4x1xf32>
    %7 = vector.extract_strided_slice %2 {offsets = [0, 0], sizes = [4, 15], strides = [1, 1]} : vector<4x16xf32> to vector<4x15xf32>
    %8 = tpu.concatenate %4, %7 in 1 : vector<4x1xf32>, vector<4x15xf32> -> vector<4x16xf32>
    %9 = vector.extract_strided_slice %2 {offsets = [0, 1], sizes = [4, 15], strides = [1, 1]} : vector<4x16xf32> to vector<4x15xf32>
    %10 = tpu.concatenate %9, %6 in 1 : vector<4x15xf32>, vector<4x1xf32> -> vector<4x16xf32>
    %11 = tpu.iota {dimensions = array<i32: 1>} : vector<4x16xi32>
    %12 = vector.broadcast %0 : i32 to vector<4x16xi32>
    %13 = arith.addi %12, %11 : vector<4x16xi32>
    %c0_i32 = arith.constant 0 : i32
    %14 = vector.broadcast %c0_i32 : i32 to vector<4x16xi32>
    %15 = arith.cmpi eq, %13, %14 : vector<4x16xi32>
    %cst = arith.constant 0.000000e+00 : f32
    %16 = vector.broadcast %cst : f32 to vector<4x16xf32>
    %17 = arith.select %15, %16, %8 : vector<4x16xi1>, vector<4x16xf32>
    %c15_i32 = arith.constant 15 : i32
    %18 = vector.broadcast %c15_i32 : i32 to vector<4x16xi32>
    %19 = arith.cmpi sge, %13, %18 : vector<4x16xi32>
    %cst_7 = arith.constant 0.000000e+00 : f32
    %20 = vector.broadcast %cst_7 : f32 to vector<4x16xf32>
    %21 = arith.select %19, %20, %10 : vector<4x16xi1>, vector<4x16xf32>
    %c0_8 = arith.constant 0 : index
    %c0_9 = arith.constant 0 : index
    %c0_10 = arith.constant 0 : index
    %22 = vector.load %arg5[%c0_8, %c0_9, %c0_10] : memref<3x4x32xf32, #tpu.memory_space<vmem>>, vector<3x4x32xf32>
    %23 = vector.extract_strided_slice %22 {offsets = [0, 0, 0], sizes = [1, 4, 32], strides = [1, 1, 1]} : vector<3x4x32xf32> to vector<1x4x32xf32>
    %24 = vector.shape_cast %23 : vector<1x4x32xf32> to vector<4x32xf32>
    %cst_11 = arith.constant dense<0.000000e+00> : vector<16x32xf32>
    %25 = tpu.matmul %17, %24, %cst_11 {dimension_numbers = #tpu.dot_dimension_numbers<[0], [0], [1], [1], [0, 1, 1, 1], [], []>} : vector<4x16xf32>, vector<4x32xf32>, vector<16x32xf32> -> vector<16x32xf32>
    %26 = vector.extract_strided_slice %22 {offsets = [1, 0, 0], sizes = [1, 4, 32], strides = [1, 1, 1]} : vector<3x4x32xf32> to vector<1x4x32xf32>
    %27 = vector.shape_cast %26 : vector<1x4x32xf32> to vector<4x32xf32>
    %cst_12 = arith.constant dense<0.000000e+00> : vector<16x32xf32>
    %28 = tpu.matmul %2, %27, %cst_12 {dimension_numbers = #tpu.dot_dimension_numbers<[0], [0], [1], [1], [0, 1, 1, 1], [], []>} : vector<4x16xf32>, vector<4x32xf32>, vector<16x32xf32> -> vector<16x32xf32>
    %29 = arith.addf %25, %28 : vector<16x32xf32>
    %30 = vector.extract_strided_slice %22 {offsets = [2, 0, 0], sizes = [1, 4, 32], strides = [1, 1, 1]} : vector<3x4x32xf32> to vector<1x4x32xf32>
    %31 = vector.shape_cast %30 : vector<1x4x32xf32> to vector<4x32xf32>
    %cst_13 = arith.constant dense<0.000000e+00> : vector<16x32xf32>
    %32 = tpu.matmul %21, %31, %cst_13 {dimension_numbers = #tpu.dot_dimension_numbers<[0], [0], [1], [1], [0, 1, 1, 1], [], []>} : vector<4x16xf32>, vector<4x32xf32>, vector<16x32xf32> -> vector<16x32xf32>
    %33 = arith.addf %29, %32 : vector<16x32xf32>
    %c0_14 = arith.constant 0 : index
    %c0_15 = arith.constant 0 : index
    %34 = vector.load %arg6[%c0_14, %c0_15] : memref<1x32xf32, #tpu.memory_space<vmem>>, vector<1x32xf32>
    %35 = vector.broadcast %34 : vector<1x32xf32> to vector<16x32xf32>
    %36 = arith.addf %33, %35 : vector<16x32xf32>
    %c0_16 = arith.constant 0 : index
    %c0_17 = arith.constant 0 : index
    %c0_18 = arith.constant 0 : index
    %37 = vector.load %arg7[%c0_16, %c0_17, %c0_18] : memref<1x16x32xf32, #tpu.memory_space<vmem>>, vector<1x16x32xf32>
    %38 = vector.shape_cast %37 : vector<1x16x32xf32> to vector<16x32xf32>
    %39 = vector.shape_cast %36 : vector<16x32xf32> to vector<1x16x32xf32>
    tpu.vector_store %arg7[%c0_16, %c0_17, %c0_18], %39 {strides = array<i32>} : memref<1x16x32xf32, #tpu.memory_space<vmem>>, vector<1x16x32xf32>,
    return
  }
  func.func @transform_0(%arg0: i32, %arg1: i32) -> (i32, i32, i32) {
    %c1_i32 = arith.constant 1 : i32
    %0 = arith.subi %arg1, %c1_i32 : i32
    %c0_i32 = arith.constant 0 : i32
    %1 = arith.maxsi %0, %c0_i32 : i32
    %c0_i32_0 = arith.constant 0 : i32
    %c0_i32_1 = arith.constant 0 : i32
    return %arg0, %c0_i32_0, %1 : i32, i32, i32
  }
  func.func @transform_1(%arg0: i32, %arg1: i32) -> (i32, i32, i32) {
    %c0_i32 = arith.constant 0 : i32
    %c0_i32_0 = arith.constant 0 : i32
    return %arg0, %c0_i32, %arg1 : i32, i32, i32
  }
  func.func @transform_2(%arg0: i32, %arg1: i32) -> (i32, i32, i32) {
    %c1_i32 = arith.constant 1 : i32
    %0 = arith.addi %arg1, %c1_i32 : i32
    %c0_i32 = arith.constant 0 : i32
    %1 = arith.minsi %0, %c0_i32 : i32
    %c0_i32_0 = arith.constant 0 : i32
    %c0_i32_1 = arith.constant 0 : i32
    return %arg0, %c0_i32_0, %1 : i32, i32, i32
  }
  func.func @transform_3(%arg0: i32, %arg1: i32) -> (i32, i32, i32) {
    %c0_i32 = arith.constant 0 : i32
    %c0_i32_0 = arith.constant 0 : i32
    %c0_i32_1 = arith.constant 0 : i32
    %c0_i32_2 = arith.constant 0 : i32
    return %c0_i32, %c0_i32_0, %c0_i32_1 : i32, i32, i32
  }
  func.func @transform_4(%arg0: i32, %arg1: i32) -> (i32, i32) {
    %c0_i32 = arith.constant 0 : i32
    %c0_i32_0 = arith.constant 0 : i32
    %c0_i32_1 = arith.constant 0 : i32
    return %c0_i32, %c0_i32_0 : i32, i32
  }
  func.func @transform_5(%arg0: i32, %arg1: i32) -> (i32, i32, i32) {
    %c0_i32 = arith.constant 0 : i32
    %c0_i32_0 = arith.constant 0 : i32
    return %arg0, %arg1, %c0_i32 : i32, i32, i32
  }
}

</mosaic_0001>

<bundles_post_ra>
// kernel: conv_tokenizer.1
= control target key start
LH: loop header
LB: loop body
LE: loop exit
PB: predicated region body
PF: predicated region fallthrough
CT: control target
= control target key end

     0   :  { %s1559_s0 = inlined_call_operand.hbm [shape: f32[2,4,16], index: 0, kind: input, shape index: {}, may-alias: {0,1,2}]   ;;  %s1560_s1 = inlined_call_operand.hbm [shape: f32[2,4,16], index: 1, kind: input, shape index: {}, may-alias: {0,1,2}]   ;;  %s1561_s2 = inlined_call_operand.hbm [shape: f32[2,4,16], index: 2, kind: input, shape index: {}, may-alias: {0,1,2}]   ;;  %s1562_s3 = inlined_call_operand.hbm [shape: f32[3,4,32], index: 3, kind: input, shape index: {}]   ;;  %s1563_s4 = inlined_call_operand.vmem [shape: f32[1,32], index: 4, kind: input, shape index: {}]   ;;  %s1564_s5 = inlined_call_operand.hbm [shape: f32[2,16,32], index: 5, kind: output, shape index: {}]  }
   0x1   :  { %1572 = sst [smem:[#allocation19_spill]] %s1560_s1 }
   0x2   :  { %10 = vsyncpa [#allocation3], 0 }
   0x3   :  { %12 = vsyncpa [#allocation3 + $0x1], 0 }
   0x4   :  { %13 = vsyncpa [#allocation6], 0 }
   0x5   :  { %15 = vsyncpa [#allocation6 + $0x1], 0 }
   0x6   :  { %16 = vsyncpa [#allocation9], 0 }
   0x7   :  { %17 = vsyncpa [#allocation4], 0 }
   0x8   :  { %19 = vsyncpa [#allocation4 + $0x1], 0  ;;  %s1320_s18 = smov 0   ;;  %s1322_s19 = smov 0  }
   0x9   :  { %s1324_s20 = smov 0   ;;  %s1326_s21 = smov 0  }
   0xa   :  { %s1328_s22 = smov 0   ;;  %s1330_s23 = smov 0  }
   0xb LB: > { %1573 = sst [smem:[#allocation15_spill]] %s1271_s22  ;;  %s37_s24 = sadd.s32 1, %s1271_s22  ;;  %s1275_s23 = sphi %s1330_s23, %s25_s23   ;;  %s1271_s22 = sphi %s1328_s22, %s1594_s22   ;;  %s1267_s21 = sphi %s1326_s21, %s1593_s21   ;;  %s1263_s20 = sphi %s1324_s20, %s1597_s20   ;;  %s1259_s19 = sphi %s1322_s19, %s1596_s19   ;;  %s1255_s18 = sphi %s1320_s18, %s1595_s18  }
   0xc   : > { %1574 = sst [smem:[#allocation16_spill]] %s1275_s23  ;;  %s52_s25 = sadd.s32 1, %s1263_s20 }
   0xd   : > { %p39_p0 = scmp.ge.s32.totalorder %s37_s24, 2  ;;  %p59_p1 = scmp.ne.s32.totalorder %s1263_s20, %s1259_s19 }
   0xe   : > { %p60_p2 = scmp.eq.s32.totalorder %s1275_s23, 0  ;;  %p1016_p5 = scmp.lt.s32.totalorder %s1275_s23, 2 }
   0xf   : > { %s1599_s24 = smov (%p39_p0, %s37_s24), 0  ;;  %s1565_s27 = sand.u32 1, %s1263_s20  }
  0x10   : > { %1575 = sst [smem:[#allocation17_spill]] %s1599_s24  ;;  %p61_p4 = por %p60_p2, %p59_p1 }
  0x11   : > { %s47_s26 = ssub.s32 %s1271_s22, %s1599_s24  ;;  %s1367_s28 = sshll.u32 %s1565_s27, 2 }
  0x12   : > { %p50_p6 = scmp.eq.s32.totalorder %s47_s26, 0  ;;  %s1370_s29 = sshll.u32 %s1271_s22, 6 }
  0x13   : > { %p1372_p7 = pnand %p1016_p5, %p61_p4  ;;  %s259_s7 = sand.u32 1, %s1275_s23  }
  0x14   : > { %s1377_s6 = scalar_select %p50_p6, %s1263_s20, %s52_s25  }
  0x15   : > { %s1578_s1 = sld [smem:[#allocation19_spill]]  ;;  %s263_s11 = scalar_lea.vmem [#allocation5], %s1367_s28 }
  0x16   : > { %1577 = sst [smem:[#allocation18_spill]] %s1377_s6  ;;  %s271_s12 = sshll.u32 %s263_s11, 4  ;;  %s272_s12 = int_to_ptr.vmem [resolvable:$true] %s271_s12 }
  0x17   : > { %s1385_s13 = scalar_lea.sflag [#allocation6], %s259_s7  ;;  %p1567_p8 = pneg %p1372_p7 }
  0x18   : > { %s1090_s14 = scalar_lea.vmem %s272_s12, 64  ;;  %s1277_s15 = smov [#allocation5]  }
  0x19   : > { %p1091_p9 = scmp.ne.s32.totalorder %s272_s12, %s1090_s14  ;;  %s1095_s16 = sshll.u32 %s1277_s15, 4  ;;  %s1096_s16 = int_to_ptr.vmem [resolvable:$false] %s1095_s16 }
  0x1a   : > { %s1097_s17 = scalar_lea.vmem %s1096_s16, 128  ;;  %p1098_p12 = scmp.lt.s32.totalorder %s272_s12, %s1096_s16 }
  0x1b   : > { %s269_s10 = scalar_lea.hbm %s1578_s1, %s1370_s29  ;;  %p1093_p10 = pnand %p1091_p9, %p1567_p8 }
  0x1c   : > { %p1099_p13 = scmp.lt.s32.totalorder %s1097_s17, %s1090_s14 }
  0x1d   : > { %p1094_p11 = pneg %p1093_p10 }
  0x1e   : > { %p1100_p0 = por %p1099_p13, %p1098_p12 }
  0x20   : > { %p1101_p2 = pnand %p1100_p0, %p1094_p11 }
  0x22   : > { %1104 = shalt.err (!%p1101_p2)
}
  0x23   : > { %1007 = dma.hbm_to_vmem [thread:$0]  (!%p1372_p7), %s269_s10, 64, %s272_s12, %s1385_s13  }
  0x24   : > { %s1396_s25 = sadd.s32 4294967295, %s1275_s23   ;;  %s929_s26 = sadd.s32 4294967294, %s1275_s23  }
  0x25   : > { %p65_p4 = scmp.ne.s32.totalorder %s1259_s19, %s1255_s18  ;;  %p1566_p5 = scmp.eq.s32.totalorder %s1396_s25, 0 }
  0x26   : > { %p195_p6 = scmp.eq.s32.totalorder %s1396_s25, 1  ;;  %p201_p9 = scmp.eq.s32.totalorder %s929_s26, 1 }
  0x27   : > { %p930_p10 = scmp.ge.s32.totalorder %s1275_s23, 1  ;;  %p1406_p11 = por %p1566_p5, %p65_p4 }
  0x28   : > { %p1413_p12 = por %p195_p6, %p59_p1  ;;  %p1417_p13 = por %p201_p9, %p65_p4 }
  0x29   : > { %p208_p0 = scmp.lt.s32.totalorder %s1275_s23, 3  ;;  %s1278_s11 = smov [#allocation8]  }
  0x2a   : > { %s220_s12 = sshll.u32 %s1278_s11, 4  ;;  %s241_s26 = scalar_lea.vmem [#allocation2], %s1367_s28  ;;  %s221_s12 = int_to_ptr.vmem [resolvable:$true] %s220_s12 }
  0x2b   : > { %p1422_p2 = pnand %p930_p10, %p208_p0  ;;  %s252_s27 = sshll.u32 %s241_s26, 4  ;;  %s1439_s27 = int_to_ptr.vmem [resolvable:$true] %s252_s27 }
  0x2c   : > { %s1116_s11 = scalar_lea.vmem %s221_s12, 192  ;;  %p1124_p0 = scmp.lt.s32.totalorder %s221_s12, %s221_s12 }
  0x2d   : > { %p997_p3 = pneg %p1422_p2  ;;  %p1117_p6 = scmp.ne.s32.totalorder %s221_s12, %s1116_s11 }
  0x2f   : > { %p1430_p1 = pnand %p997_p3, %p1566_p5  ;;  %p1125_p3 = scmp.lt.s32.totalorder %s1116_s11, %s1116_s11 }
  0x31   : > { %p1107_p4 = pneg %p1430_p1  ;;  %p1126_p5 = por %p1125_p3, %p1124_p0 }
  0x33   : > { %p1119_p9 = pnand %p1117_p6, %p1107_p4 }
  0x35   : > { %p1120_p10 = pneg %p1119_p9 }
  0x37   : > { %p1127_p8 = pnand %p1126_p5, %p1120_p10 }
  0x39   : > { %1130 = shalt.err (!%p1127_p8)
}
  0x3a   : > { %s1279_s1 = smov 64   ;;  %s1280_s15 = smov 4  }
  0x3b   : > { %1000 = dma.hbm_to_vmem [thread:$0]  (!%p1430_p1), %s1562_s3, 192, %s221_s12, [#allocation9], %s1279_s1, %s1279_s1, %s1280_s15  }
  0x3c   : > { %s1584_s17 = sand.u32 1, %s1263_s20   ;;  %s1144_s22 = scalar_lea.vmem %s1439_s27, 64 }
  0x3d   : > { %s238_s24 = scalar_lea.sflag [#allocation3], %s1584_s17  ;;  %p1145_p4 = scmp.ne.s32.totalorder %s1439_s27, %s1144_s22 }
  0x3e   : > { %p1585_p5 = pneg %p1372_p7  ;;  %s1281_s11 = smov [#allocation2]  }
  0x3f   : > { %s1149_s6 = sshll.u32 %s1281_s11, 4  ;;  %s1150_s6 = int_to_ptr.vmem [resolvable:$false] %s1149_s6 }
  0x40   : > { %p1147_p8 = pnand %p1145_p4, %p1585_p5  ;;  %s1151_s23 = scalar_lea.vmem %s1150_s6, 128 }
  0x41   : > { %p1152_p9 = scmp.lt.s32.totalorder %s1439_s27, %s1150_s6  ;;  %p1153_p10 = scmp.lt.s32.totalorder %s1151_s23, %s1144_s22 }
  0x42   : > { %p1148_p6 = pneg %p1147_p8 }
  0x43   : > { %p1154_p0 = por %p1153_p10, %p1152_p9 }
  0x45   : > { %p1155_p3 = pnand %p1154_p0, %p1148_p6 }
  0x47   : > { %1158 = shalt.err (!%p1155_p3)
}
  0x48   : > { %s1586_s14 = scalar_lea.hbm %s1559_s0, %s1370_s29  ;;  %s291_s6 = scalar_lea.hbm %s1561_s2, %s1370_s29 }
  0x49   : > { %1004 = dma.hbm_to_vmem [thread:$0]  (!%p1372_p7), %s1586_s14, 64, %s1439_s27, %s238_s24  }
  0x4a   : > { %s282_s22 = scalar_lea.vmem [#allocation7], %s1367_s28  ;;  %p1587_p4 = pmov %p1585_p5 }
  0x4b   : > { %s293_s23 = sshll.u32 %s282_s22, 4  ;;  %s1282_s26 = smov [#allocation7]   ;;  %s294_s23 = int_to_ptr.vmem [resolvable:$true] %s293_s23 }
  0x4c   : > { %s1172_s16 = scalar_lea.vmem %s294_s23, 64  ;;  %s1177_s11 = sshll.u32 %s1282_s26, 4  ;;  %s1178_s11 = int_to_ptr.vmem [resolvable:$false] %s1177_s11 }
  0x4d   : > { %p1173_p1 = scmp.ne.s32.totalorder %s294_s23, %s1172_s16  ;;  %s1179_s1 = scalar_lea.vmem %s1178_s11, 128 }
  0x4e   : > { %p1180_p6 = scmp.lt.s32.totalorder %s294_s23, %s1178_s11  ;;  %p1181_p9 = scmp.lt.s32.totalorder %s1179_s1, %s1172_s16 }
  0x4f   : > { %p1175_p5 = pnand %p1173_p1, %p1587_p4 }
  0x50   : > { %p1182_p10 = por %p1181_p9, %p1180_p6 }
  0x51   : > { %p1176_p8 = pneg %p1175_p5 }
  0x53   : > { %p1183_p0 = pnand %p1182_p10, %p1176_p8 }
  0x55   : > { %1186 = shalt.err (!%p1183_p0)
}
  0x56   : > { %1010 = dma.hbm_to_vmem [thread:$0]  (!%p1372_p7), %s291_s6, 64, %s294_s23, %s1385_s13  }
  0x57   : > { %302 = sbr.rel (%p1422_p2) target bundleno = 565 (0x235), region = 40  ;;  %s1478_s24 = sand.u32 (!%p1422_p2), 1, %s1259_s19  }
  0x58   : > { %s940_s27 = sshll.u32 (!%p1422_p2), %s1478_s24, 2  ;;  %s305_s28 = scalar_lea.sflag (!%p1422_p2), [#allocation3], %s1478_s24 }
  0x59   : > { %s308_s29 = scalar_lea.vmem (!%p1422_p2), [#allocation2], %s940_s27 }
  0x5c   : > { %1238 = dma.done.wait (%p1406_p11), %s305_s28, 64  }
  0x5d   : > { %1240 = vsyncadd (%p1406_p11), %s305_s28, 4294967232  ;;  %s313_s30 = sand.u32 1, %s1396_s25   ;;  %s317_s10 = scalar_lea.vmem [#allocation5], %s940_s27 }
  0x5e   : > { %s314_s13 = scalar_lea.sflag [#allocation6], %s313_s30 }
  0x5f   : > { %1242 = dma.done.wait (%p1406_p11), %s314_s13, 128  }
  0x60   : > { %1244 = vsyncadd (%p1406_p11), %s314_s13, 4294967168  ;;  %s326_s12 = scalar_lea.vmem [#allocation7], %s940_s27  ;;  %p1588_p7 = scmp.eq.s32.totalorder %s1396_s25, 0 }
  0x62   : > { %1246 = dma.done.wait (%p1588_p7), [#allocation9], 192   ;;  %p1589_p2 = pmov %p1588_p7 }
  0x63   : > { %v376_v0 = vld [vmem:[%s308_s29] sm:$0xf]  ;;  %v375_v1 = vld [vmem:[%s317_s10] sm:$0xf]  ;;  %s1283_s14 = smov 113   ;;  %s1284_s17 = smov 127   ;;  %v397_v4 = vlaneseq }
  0x64   : > { %1248 = vsyncadd (%p1589_p2), [#allocation9], 4294967104  ;;  %379 = vrot.lane.b32.xlu0 %v376_v0, %s1283_s14  ;;  %388 = vrot.lane.b32.xlu1 %v375_v1, %s1284_s17  ;;  %v377_v2 = vld [vmem:[%s326_s12] sm:$0xf]  ;;  %s1285_s15 = smov 15   ;;  %s1286_s6 = smov 1  }
  0x65   : > { %v406_v3 = vld [vmem:[#allocation8 + $0x4] sm:$0xf]  ;;  %vm447_vm0 = vcmask 1043456   ;;  %v398_v5 = vand.u32 127, %v397_v4  ;;  %vm395_vm1 = vcmask 121856   ;;  %vm386_vm2 = vcmask 7168  }
  0x66   : > { %970 = vmatprep.subr.msk.mxu0 %vm447_vm0, %v406_v3  ;;  %v407_v10 = vld [vmem:[#allocation8 + $0x8] sm:$0xf]  ;;  %v405_v11 = vld [vmem:[#allocation8] sm:$0xf]  ;;  %vm440_vm5 = vcmask 31744   ;;  %s944_s25 = sshll.u32 %s1478_s24, 4 }
  0x67   : > { %971 = vmatpush3.msk.msra.mxu0 %vm447_vm0, %v406_v3  ;;  %vm403_vm3 = vcmp.ge.s32.totalorder %v398_v5, 15  ;;  %vm401_vm4 = vcmp.eq.s32.totalorder %v398_v5, 0  ;;  %975 = vmatprep.subr.msk.mxu1 %vm447_vm0, %v405_v11  ;;  %v954_v27 = vld [vmem:[%s1563_s4] ss:$0 sm:$0xff]  ;;  %s960_s23 = sshll.u32 %s1267_s21, 8  ;;  %s366_s16 = scalar_lea.vmem [#allocation10], %s944_s25 }
  0x68   : > { %392 = vrot.lane.b32.xlu1 %v377_v2, %s1285_s15  ;;  %383 = vrot.lane.b32.xlu0 %v375_v1, %s1286_s6  ;;  %s788_s26 = sshll.u32 %s366_s16, 4  ;;  %vm769_vm6 = vcmask 261120   ;;  %s1509_s27 = scalar_lea.hbm %s1564_s5, %s960_s23  ;;  %s1511_s26 = int_to_ptr.vmem [resolvable:$true] %s788_s26 }
  0x69   : > { %980 = vmatprep.subr.msk.mxu0 %vm447_vm0, %v407_v10  ;;  %976 = vmatpush3.msk.msra.mxu1 %vm447_vm0, %v405_v11  ;;  %s773_s21 = scalar_lea.sflag [#allocation4], %s1478_s24  ;;  %s1187_s28 = scalar_lea.vmem %s1511_s26, 256 }
  0x6a   : > { %p1188_p11 = scmp.ne.s32.totalorder %s1511_s26, %s1187_s28  ;;  %s1287_s29 = smov [#allocation10]  }
  0x6b   : > { %s1191_s30 = sshll.u32 %s1287_s29, 4  ;;  %s1192_s30 = int_to_ptr.vmem [resolvable:$false] %s1191_s30 }
  0x6c   : > { %p1189_p3 = pnand %p1188_p11, %p1413_p12  ;;  %s1193_s13 = scalar_lea.vmem %s1192_s30, 512 }
  0x6d   : > { %p1194_p4 = scmp.lt.s32.totalorder %s1511_s26, %s1192_s30  ;;  %p1195_p5 = scmp.lt.s32.totalorder %s1193_s13, %s1187_s28 }
  0x6e   : > { %p1190_p1 = pneg %p1189_p3 }
  0x6f   : > { %p1196_p8 = por %p1195_p5, %p1194_p4 }
  0x71   : > { %p1197_p6 = pnand %p1196_p8, %p1190_p1 }
  0x86   : > { %408 = vxpose.xlu0.b32.start.end [1/1] (short) (narrow) %v375_v1, 16 }
  0xd6   : > { %v380_v6 = vpop.permute.xlu0 %379  ;;  %v389_v7 = vpop.permute.xlu1 %388 }
  0xda   : > { %v393_v8 = vpop.permute.xlu1 %392  ;;  %v384_v9 = vpop.permute.xlu0 %383 }
  0xdb   : > { %v396_v12 = vsel %vm395_vm1, %v389_v7, %v393_v8  ;;  %v387_v13 = vsel %vm386_vm2, %v380_v6, %v384_v9 }
  0xdc   : > { %v404_v14 = vsel %vm403_vm3, 0.0, %v396_v12  ;;  %v402_v15 = vsel %vm401_vm4, 0.0, %v387_v13 }
  0xdd   : > { %642 = vxpose.xlu0.b32.start.end [1/1] (short) (narrow) %v404_v14, 16  ;;  %526 = vxpose.xlu1.b32.start.end [1/1] (short) (narrow) %v402_v15, 16 }
 0x102   : > { %v424_v16 = vpop.trf.xlu0 }
 0x103   : > { %972 = vmatprep.mubr.msk.f32.mxu0 %vm440_vm5, %v424_v16 }
 0x106   : > { %v425_v17 = vpop.trf.xlu0 }
 0x107   : > { %973 = vmatmul.mubr.msk.f32.vlgmr.msra.gmra.mxu0 %vm440_vm5, %v425_v17 }
 0x108   : > { %981 = vmatpush3.msk.msra.mxu0 %vm447_vm0, %v407_v10 }
 0x159   : > { %v542_v18 = vpop.trf.xlu1  ;;  %v658_v19 = vpop.trf.xlu0 }
 0x15a   : > { %977 = vmatprep.mubr.msk.f32.mxu1 %vm440_vm5, %v542_v18  ;;  %982 = vmatprep.mubr.msk.f32.mxu0 %vm440_vm5, %v658_v19 }
 0x15d   : > { %v543_v20 = vpop.trf.xlu1  ;;  %v659_v21 = vpop.trf.xlu0 }
 0x15e   : > { %978 = vmatmul.mubr.msk.f32.vlgmr.msra.gmra.mxu1 %vm440_vm5, %v543_v20  ;;  %983 = vmatmul.mubr.msk.f32.vlgmr.msra.gmra.mxu0 %vm440_vm5, %v659_v21 }
 0x1c7   : > { %v974_v22 = vpop.f32.mrf.mxu0 }
 0x1c9   : > { %v517_v23 = vpop.f32.mrf.mxu0 }
 0x21e   : > { %v979_v24 = vpop.f32.mrf.mxu1  ;;  %v984_v25 = vpop.f32.mrf.mxu0 }
 0x21f   : > { %v639_v26 = vadd.f32 %v979_v24, %v974_v22 }
 0x220   : > { %v633_v28 = vpop.f32.mrf.mxu1  ;;  %v749_v31 = vpop.f32.mrf.mxu0 }
 0x221   : > { %v759_v29 = vadd.f32 %v984_v25, %v639_v26  ;;  %v634_v30 = vadd.f32 %v633_v28, %v517_v23 }
 0x223   : > { %v768_v32 = vadd.f32 %v954_v27, %v759_v29  ;;  %v758_v33 = vadd.f32 %v749_v31, %v634_v30 }
 0x225   : > { %771 = vst.msk [vmem:[%s366_s16 + $0x8] sm:$0xff] %vm769_vm6, %v768_v32  ;;  %v767_v34 = vadd.f32 %v954_v27, %v758_v33 }
 0x227   : > { %770 = vst.msk [vmem:[%s366_s16] sm:$0xff] %vm769_vm6, %v767_v34 }
 0x228   : > { %1200 = shalt.err (!%p1197_p6)
}
 0x229   : > { %s1201_s10 = scalar_lea.hbm %s1509_s27, 256  ;;  %s1205_s17 = scalar_lea.hbm %s1564_s5, 512 }
 0x22a   : > { %p1202_p9 = scmp.ne.s32.totalorder %s1509_s27, %s1201_s10  ;;  %p1206_p7 = scmp.lt.s32.totalorder %s1509_s27, %s1564_s5 }
 0x22b   : > { %p1207_p2 = scmp.lt.s32.totalorder %s1205_s17, %s1201_s10 }
 0x22c   : > { %p1203_p10 = pnand %p1202_p9, %p1413_p12 }
 0x22d   : > { %p1208_p11 = por %p1207_p2, %p1206_p7 }
 0x22e   : > { %p1204_p0 = pneg %p1203_p10 }
 0x230   : > { %p1209_p3 = pnand %p1208_p11, %p1204_p0 }
 0x232   : > { %1212 = shalt.err (!%p1209_p3)
}
 0x233   : > { %s1288_s25 = smov 128   ;;  %s1289_s7 = smov 8  }
 0x234   : > { %995 = dma.vmem_to_hbm [thread:$0]  (%p1413_p12), %s1511_s26, 256, %s1509_s27, %s773_s21, %s1288_s25, %s1288_s25, %s1289_s7  }
 0x235 PF: > { %s1590_s22 = sld [smem:[#allocation16_spill]]  ;;  %s803_s23 = sand.u32 1, %s1255_s18  }
 0x236   : > { %s804_s16 = scalar_lea.sflag [#allocation4], %s803_s23 }
 0x23b   : > { %p1591_p1 = scmp.ge.s32.totalorder %s1590_s22, 2 }
 0x23d   : > { %p1012_p4 = pnand %p1591_p1, %p1417_p13 }
 0x23f   : > { %p1013_p5 = pneg %p1012_p4 }
 0x241   : > { %1250 = dma.done.wait (%p1013_p5), %s804_s16, 256  }
 0x242   : > { %1252 = vsyncadd (%p1013_p5), %s804_s16, 4294967040  ;;  %s25_s23 = sadd.s32 1, %s1590_s22   ;;  %s1592_s8 = sld [smem:[#allocation18_spill]] }
 0x243   : > { %p22_p8 = scmp.ge.s32.totalorder %s25_s23, 4   ;;  %s1593_s21 = sld [smem:[#allocation15_spill]] }
 0x244   : > { %s1594_s22 = sld [smem:[#allocation17_spill]]  ;;  %s1595_s18 = smov %s1259_s19 }
 0x245   : > { %s1596_s19 = smov %s1263_s20  ;;  %24 = sbr.rel (!%p22_p8) target bundleno = 11 (0xb), region = 113 }
 0x248   : > { %s1597_s20 = smov %s1592_s8 }
 0x24a   :  { %809 = vsyncpa [#allocation3], 1 }
 0x24b   :  { %811 = vsyncpa [#allocation3 + $0x1], 1 }
 0x24c   :  { %812 = vsyncpa [#allocation6], 1 }
 0x24d   :  { %814 = vsyncpa [#allocation6 + $0x1], 1 }
 0x24e   :  { %815 = vsyncpa [#allocation9], 1 }
 0x24f   :  { %816 = vsyncpa [#allocation4], 1 }
 0x250   :  { %818 = vsyncpa [#allocation4 + $0x1], 1 }

</bundles_post_ra>
